<compile_context>
chip_gen: v5e
topology: v5e:2x2
jax: 0.10.0
libtpu: 0.0.40
codegen_flags: <defaults>
</compile_context>

<pallas_src>
import jax
import jax.numpy as jnp
from jax.experimental import pallas as pl
from jax.experimental.pallas import tpu as pltpu

_NEG_BIG = -1e9  # bias value for padded (fake) classes -> exp() underflows to 0


def _prob_kernel(x_ref, w_ref, b_ref, o_ref, acc_ref):
    k = pl.program_id(1)

    @pl.when(k == 0)
    def _():
        acc_ref[...] = jnp.zeros_like(acc_ref)

    # Pure MXU accumulate in the inner K loop (bf16 inputs, f32 accumulator).
    acc_ref[...] += jnp.dot(x_ref[...], w_ref[...],
                            preferred_element_type=jnp.float32)

    @pl.when(k == pl.num_programs(1) - 1)
    def _():
        logits = acc_ref[...] + b_ref[...]          # bias added once, at finalize
        m = jnp.max(logits, axis=-1, keepdims=True)
        e = jnp.exp(logits - m)
        denom = jnp.sum(e, axis=-1, keepdims=True)
        # divide -> EUP reciprocal (VALU slot stays free)
        o_ref[...] = (e * pl.reciprocal(denom, approx=True)).astype(o_ref.dtype)


def _round_up(v, m):
    return ((v + m - 1) // m) * m


def _pick_tk(feat):
    for cand in (512, 256, 128):
        if feat % cand == 0:
            return cand
    return feat  # full-extent fallback


def prob_wrapper_forward(x_nchw, weight_fn, bias_n):
    """x_nchw: [B, C, H, W]; weight_fn: [F, N]; bias_n: [N]. Returns [B, N] probs."""
    B = x_nchw.shape[0]
    F, N = weight_fn.shape
    N_pad = _round_up(N, 128)  # lane-dense output / MXU-native width

    # Glue: flatten NCHW exactly like torch .view(B, -1); cast to bf16.
    x_flat = x_nchw.reshape(B, F).astype(jnp.bfloat16)
    w_pad = (jnp.zeros((F, N_pad), jnp.bfloat16)
             .at[:, :N].set(weight_fn.astype(jnp.bfloat16)))
    b_pad = (jnp.full((1, N_pad), _NEG_BIG, jnp.float32)
             .at[0, :N].set(bias_n.astype(jnp.float32)))

    # Tile sizes: conservative for v7x's 64 MiB VMEM (32 MiB scoped default),
    # 128-aligned for v5e.  Full-extent batch block when B is small.
    tm = 256 if B % 256 == 0 else B
    tk = _pick_tk(F)
    grid = (B // tm, F // tk)

    cost = pl.CostEstimate(
        flops=2 * B * F * N_pad,
        transcendentals=B * N_pad,
        bytes_accessed=2 * B * F + 2 * F * N_pad + 4 * N_pad + 4 * B * N_pad,
    )

    out = pl.pallas_call(
        _prob_kernel,
        out_shape=jax.ShapeDtypeStruct((B, N_pad), jnp.float32),
        grid_spec=pltpu.PrefetchScalarGridSpec(
            num_scalar_prefetch=0,
            grid=grid,
            in_specs=[
                pl.BlockSpec((tm, tk), lambda i, k: (i, k)),        # x tile
                pl.BlockSpec((tk, N_pad), lambda i, k: (k, 0)),     # w tile
                pl.BlockSpec((1, N_pad), lambda i, k: (0, 0)),      # bias (untiled)
            ],
            out_specs=pl.BlockSpec((tm, N_pad), lambda i, k: (i, 0)),
            scratch_shapes=[pltpu.VMEM((tm, N_pad), jnp.float32)],  # accumulator
        ),
        compiler_params=pltpu.CompilerParams(
            dimension_semantics=("parallel", "arbitrary"),
            vmem_limit_bytes=32 * 1024 * 1024,
        ),
        cost_estimate=cost,
    )(x_flat, w_pad, b_pad)

    # Drop padded (fake) classes.
    return out[:, :N]


if __name__ == "__main__":
    # Small shapes consistent with an NCHW image classifier.
    B, C, H, W = 2, 4, 16, 16
    NUM_CLASSES = 8
    F = C * H * W

    key = jax.random.PRNGKey(0)
    kx, kw, kb = jax.random.split(key, 3)

    # TODO(synk): the real ProbWrapper wraps an arbitrary torch model loaded
    # from disk; here the "model" is materialized as a single linear layer and
    # `loss.to_proba` as softmax.
    x = jax.random.normal(kx, (B, C, H, W), dtype=jnp.float32)
    weight = jax.random.normal(kw, (F, NUM_CLASSES), dtype=jnp.float32) * 0.02
    bias = jax.random.normal(kb, (NUM_CLASSES,), dtype=jnp.float32) * 0.1

    probs = prob_wrapper_forward(x, weight, bias)
    probs = jax.block_until_ready(probs)

    # Reference in plain JAX (same bf16 input precision as the kernel).
    logits_ref = jnp.dot(x.reshape(B, F).astype(jnp.bfloat16),
                         weight.astype(jnp.bfloat16),
                         preferred_element_type=jnp.float32) + bias
    probs_ref = jax.nn.softmax(logits_ref, axis=-1)

    assert probs.shape == (B, NUM_CLASSES)
    assert jnp.allclose(probs, probs_ref, atol=5e-3, rtol=5e-3)
    assert jnp.allclose(jnp.sum(probs, axis=-1), 1.0, atol=5e-3)

    print("KERNEL_OK")
</pallas_src>

<mosaic_0001>
module attributes {stable_mosaic.version = 11 : i64} {
  func.func @_prob_kernel(%arg0: i32, %arg1: i32, %arg2: memref<2x512xbf16, #tpu.memory_space<vmem>>, %arg3: memref<512x128xbf16, #tpu.memory_space<vmem>>, %arg4: memref<1x128xf32, #tpu.memory_space<vmem>>, %arg5: memref<2x128xf32, #tpu.memory_space<vmem>>, %arg6: memref<2x128xf32, #tpu.memory_space<vmem>>) attributes {dimension_semantics = [#tpu.dimension_semantics<parallel>, #tpu.dimension_semantics<arbitrary>], iteration_bounds = array<i64: 1, 2>, scalar_prefetch = 0 : i64, scratch_operands = 1 : i64, tpu.core_type = #tpu.core_type<tc>, window_params = [{transform_indices = @transform_0, window_bounds = array<i64: 2, 512>}, {transform_indices = @transform_1, window_bounds = array<i64: 512, 128>}, {pipeline_mode = #tpu.pipeline_mode<synchronous>, transform_indices = @transform_2, window_bounds = array<i64: 1, 128>}, {transform_indices = @transform_3, window_bounds = array<i64: 2, 128>}]} {
    %c0_i32 = arith.constant 0 : i32
    %0 = arith.cmpi eq, %arg1, %c0_i32 : i32
    %1 = arith.extui %0 : i1 to i32
    %c0_i32_0 = arith.constant 0 : i32
    %2 = arith.cmpi ne, %1, %c0_i32_0 : i32
    scf.if %2 {
      %cst_9 = arith.constant 0.000000e+00 : f32
      %12 = vector.broadcast %cst_9 : f32 to vector<2x128xf32>
      %c0_10 = arith.constant 0 : index
      %c0_11 = arith.constant 0 : index
      %13 = vector.load %arg6[%c0_10, %c0_11] : memref<2x128xf32, #tpu.memory_space<vmem>>, vector<2x128xf32>
      tpu.vector_store %arg6[%c0_10, %c0_11], %12 {strides = array<i32>} : memref<2x128xf32, #tpu.memory_space<vmem>>, vector<2x128xf32>,
    } else {
    }
    %c0 = arith.constant 0 : index
    %c0_1 = arith.constant 0 : index
    %3 = vector.load %arg6[%c0, %c0_1] : memref<2x128xf32, #tpu.memory_space<vmem>>, vector<2x128xf32>
    %c0_2 = arith.constant 0 : index
    %c0_3 = arith.constant 0 : index
    %4 = vector.load %arg2[%c0_2, %c0_3] : memref<2x512xbf16, #tpu.memory_space<vmem>>, vector<2x512xbf16>
    %c0_4 = arith.constant 0 : index
    %c0_5 = arith.constant 0 : index
    %5 = vector.load %arg3[%c0_4, %c0_5] : memref<512x128xbf16, #tpu.memory_space<vmem>>, vector<512x128xbf16>
    %cst = arith.constant dense<0.000000e+00> : vector<2x128xf32>
    %6 = tpu.matmul %4, %5, %cst {dimension_numbers = #tpu.dot_dimension_numbers<[1], [0], [0], [1], [0, 0, 1, 1], [], []>} : vector<2x512xbf16>, vector<512x128xbf16>, vector<2x128xf32> -> vector<2x128xf32>
    %7 = arith.addf %3, %6 : vector<2x128xf32>
    %c0_6 = arith.constant 0 : index
    %c0_7 = arith.constant 0 : index
    %8 = vector.load %arg6[%c0_6, %c0_7] : memref<2x128xf32, #tpu.memory_space<vmem>>, vector<2x128xf32>
    tpu.vector_store %arg6[%c0_6, %c0_7], %7 {strides = array<i32>} : memref<2x128xf32, #tpu.memory_space<vmem>>, vector<2x128xf32>,
    %c1_i32 = arith.constant 1 : i32
    %9 = arith.cmpi eq, %arg1, %c1_i32 : i32
    %10 = arith.extui %9 : i1 to i32
    %c0_i32_8 = arith.constant 0 : i32
    %11 = arith.cmpi ne, %10, %c0_i32_8 : i32
    scf.if %11 {
      %c0_9 = arith.constant 0 : index
      %c0_10 = arith.constant 0 : index
      %12 = vector.load %arg6[%c0_9, %c0_10] : memref<2x128xf32, #tpu.memory_space<vmem>>, vector<2x128xf32>
      %c0_11 = arith.constant 0 : index
      %c0_12 = arith.constant 0 : index
      %13 = vector.load %arg4[%c0_11, %c0_12] : memref<1x128xf32, #tpu.memory_space<vmem>>, vector<1x128xf32>
      %14 = vector.broadcast %13 : vector<1x128xf32> to vector<2x128xf32>
      %15 = arith.addf %12, %14 : vector<2x128xf32>
      %cst_13 = arith.constant dense<0xFF800000> : vector<2xf32>
      %16 = vector.multi_reduction <maximumf>, %15, %cst_13 [1] : vector<2x128xf32> to vector<2xf32>
      %17 = vector.shape_cast %16 : vector<2xf32> to vector<2x1xf32>
      %18 = vector.broadcast %17 : vector<2x1xf32> to vector<2x128xf32>
      %19 = arith.subf %15, %18 : vector<2x128xf32>
      %20 = math.exp %19 : vector<2x128xf32>
      %cst_14 = arith.constant dense<0.000000e+00> : vector<2xf32>
      %21 = vector.multi_reduction <add>, %20, %cst_14 [1] : vector<2x128xf32> to vector<2xf32>
      %22 = vector.shape_cast %21 : vector<2xf32> to vector<2x1xf32>
      %23 = tpu.reciprocal %22 {approx = true} : vector<2x1xf32> -> vector<2x1xf32>
      %24 = vector.broadcast %23 : vector<2x1xf32> to vector<2x128xf32>
      %25 = arith.mulf %20, %24 : vector<2x128xf32>
      %c0_15 = arith.constant 0 : index
      %c0_16 = arith.constant 0 : index
      %26 = vector.load %arg5[%c0_15, %c0_16] : memref<2x128xf32, #tpu.memory_space<vmem>>, vector<2x128xf32>
      tpu.vector_store %arg5[%c0_15, %c0_16], %25 {strides = array<i32>} : memref<2x128xf32, #tpu.memory_space<vmem>>, vector<2x128xf32>,
    } else {
    }
    return
  }
  func.func @transform_0(%arg0: i32, %arg1: i32) -> (i32, i32) {
    %c0_i32 = arith.constant 0 : i32
    return %arg0, %arg1 : i32, i32
  }
  func.func @transform_1(%arg0: i32, %arg1: i32) -> (i32, i32) {
    %c0_i32 = arith.constant 0 : i32
    %c0_i32_0 = arith.constant 0 : i32
    return %arg1, %c0_i32 : i32, i32
  }
  func.func @transform_2(%arg0: i32, %arg1: i32) -> (i32, i32) {
    %c0_i32 = arith.constant 0 : i32
    %c0_i32_0 = arith.constant 0 : i32
    %c0_i32_1 = arith.constant 0 : i32
    return %c0_i32, %c0_i32_0 : i32, i32
  }
  func.func @transform_3(%arg0: i32, %arg1: i32) -> (i32, i32) {
    %c0_i32 = arith.constant 0 : i32
    %c0_i32_0 = arith.constant 0 : i32
    return %arg0, %c0_i32 : i32, i32
  }
}

</mosaic_0001>

<bundles_post_ra>
// kernel: tpu_custom_call.1
= control target key start
LH: loop header
LB: loop body
LE: loop exit
PB: predicated region body
PF: predicated region fallthrough
CT: control target
= control target key end

     0   :  { %8 = vsyncpa [#allocation4], 0  ;;  %s1267_s0 = inlined_call_operand.hbm [shape: bf16[2,1024], index: 0, kind: input, shape index: {}]   ;;  %s1268_s1 = inlined_call_operand.hbm [shape: bf16[1024,128], index: 1, kind: input, shape index: {}]   ;;  %s1269_s2 = inlined_call_operand.vmem [shape: f32[1,128], index: 2, kind: input, shape index: {}]   ;;  %s1270_s3 = inlined_call_operand.hbm [shape: f32[2,128], index: 3, kind: output, shape index: {}]  }
   0x1   :  { %10 = vsyncpa [#allocation4 + $0x1], 0 }
   0x2   :  { %11 = vsyncpa [#allocation7], 0 }
   0x3   :  { %13 = vsyncpa [#allocation7 + $0x1], 0 }
   0x4   :  { %14 = vsyncpa [#allocation5], 0  ;;  %s1113_s12 = smov 0   ;;  %s1115_s13 = smov 0  }
   0x5   :  { %s1117_s14 = smov 0   ;;  %s1119_s15 = smov 0  }
   0x6   :  { %s1121_s16 = smov 0   ;;  %s1123_s17 = smov 0  }
   0x7 LB: > { %s688_s18 = sadd.s32 4294967295, %s1087_s17   ;;  %s29_s19 = sadd.s32 1, %s1083_s16  ;;  %s1087_s17 = sphi %s1123_s17, %s20_s17   ;;  %s1083_s16 = sphi %s1121_s16, %s1278_s16   ;;  %s1079_s15 = sphi %s1119_s15, %s1277_s15   ;;  %s1075_s14 = sphi %s1117_s14, %s1276_s14   ;;  %s1071_s13 = sphi %s1115_s13, %s1275_s13   ;;  %s1067_s12 = sphi %s1113_s12, %s1274_s12  }
   0x8   : > { %p30_p0 = scmp.ge.s32.totalorder %s29_s19, 2  ;;  %s41_s20 = sadd.s32 1, %s1075_s14 }
   0x9   : > { %p48_p1 = scmp.ne.s32.totalorder %s1075_s14, %s1071_s13  ;;  %p49_p2 = scmp.eq.s32.totalorder %s1087_s17, 0 }
   0xa   : > { %s1280_s19 = smov (%p30_p0, %s29_s19), 0  ;;  %p54_p4 = scmp.ne.s32.totalorder %s1071_s13, %s1067_s12 }
   0xb   : > { %p1149_p3 = por %p49_p2, %p48_p1  ;;  %s37_s22 = ssub.s32 %s1083_s16, %s1280_s19 }
   0xc   : > { %p55_p5 = scmp.eq.s32.totalorder %s688_s18, 0  ;;  %p39_p6 = scmp.eq.s32.totalorder %s37_s22, 0 }
   0xd   : > { %p881_p8 = scmp.lt.s32.totalorder %s1087_s17, 2  ;;  %s1167_s25 = sand.u32 1, %s1075_s14  }
   0xe   : > { %p1158_p7 = por %p55_p5, %p54_p4  ;;  %s692_s26 = sshll.u32 %s1083_s16, 2 }
   0xf   : > { %s1164_s24 = scalar_select %p39_p6, %s1075_s14, %s41_s20  }
  0x10   : > { %s691_s27 = sshll.u32 %s1167_s25, 2  ;;  %s164_s30 = scalar_lea.hbm %s1267_s0, %s692_s26 }
  0x11   : > { %s166_s4 = sshll.u32 %s164_s30, 4  ;;  %s158_s5 = scalar_lea.vmem [#allocation3], %s691_s27  ;;  %s167_s4 = int_to_ptr.hbm [resolvable:$true] %s166_s4 }
  0x12   : > { %s168_s6 = sshll.u32 %s158_s5, 4  ;;  %p1176_p9 = pnand %p881_p8, %p1149_p3  ;;  %s169_s6 = int_to_ptr.vmem [resolvable:$true] %s168_s6 }
  0x13   : > { %p696_p10 = scmp.ge.s32.totalorder %s1087_s17, 1  ;;  %p195_p11 = scmp.lt.s32.totalorder %s1087_s17, 3 }
  0x14   : > { %s693_s8 = sshll.u32 %s1167_s25, 8  ;;  %s155_s9 = scalar_lea.sflag [#allocation4], %s1167_s25 }
  0x15   : > { %877 = dma.hbm_to_vmem [thread:$0]  (!%p1176_p9), %s167_s4, 64, %s169_s6, %s155_s9  }
  0x16   : > { %p196_p12 = pnand %p696_p10, %p195_p11  ;;  %s833_s10 = sshll.u32 %s1083_s16, 8 }
  0x17   : > { %s179_s11 = scalar_lea.vmem [#allocation6], %s693_s8  ;;  %s184_s21 = scalar_lea.hbm %s1268_s1, %s833_s10 }
  0x18   : > { %s187_s12 = sshll.u32 %s179_s11, 4  ;;  %s185_s26 = sshll.u32 %s184_s21, 4  ;;  %s188_s12 = int_to_ptr.vmem [resolvable:$true] %s187_s12  ;;  %s186_s26 = int_to_ptr.hbm [resolvable:$true] %s185_s26 }
  0x19   : > { %s176_s27 = scalar_lea.sflag [#allocation7], %s1167_s25  ;;  %s1089_s28 = smov 64  }
  0x1a   : > { %s1090_s29 = smov 4   ;;  %199 = sbr.rel (%p196_p12) target bundleno = 487 (0x1e7), region = 32 }
  0x1b   : > { %880 = dma.hbm_to_vmem [thread:$0]  (!%p1176_p9), %s186_s26, 4096, %s188_s12, %s176_s27, %s1089_s28, %s1089_s28, %s1090_s29  }
  0x1c   : > { %s201_s30 = sand.u32 (!%p196_p12), 1, %s1071_s13  }
  0x1d   : > { %s697_s4 = sshll.u32 (!%p196_p12), %s201_s30, 2  ;;  %s202_s5 = scalar_lea.sflag (!%p196_p12), [#allocation4], %s201_s30 }
  0x1e   : > { %s1194_s6 = scalar_lea.vmem (!%p196_p12), [#allocation3], %s697_s4 }
  0x1f   : > { %1054 = dma.done.wait (%p1158_p7), %s202_s5, 64  }
  0x20   : > { %1056 = vsyncadd (%p1158_p7), %s202_s5, 4294967232  ;;  %s698_s8 = sshll.u32 %s201_s30, 8  ;;  %s212_s25 = scalar_lea.sflag [#allocation7], %s201_s30 }
  0x21   : > { %s1200_s9 = scalar_lea.vmem [#allocation6], %s698_s8 }
  0x22   : > { %1058 = dma.done.wait (%p1158_p7), %s212_s25, 4096  }
  0x23   : > { %1060 = vsyncadd (%p1158_p7), %s212_s25, 4294963200  ;;  %p699_p13 = scmp.ne.s32.totalorder %s1079_s15, 0 }
  0x25   : > { %244 = sbr.rel (%p699_p13) target bundleno = 44 (0x2c), region = 44 }
  0x2a   : > { %v1091_v0 = vmov 0.0  }
  0x2b   : > { %245 = vst [vmem:[#allocation2] sm:$0x3] %v1091_v0 }
  0x2c PF: > { %v841_v1 = vld [vmem:[%s1200_s9 + $0x38] sm:$0xff]  ;;  %v840_v5 = vld [vmem:[%s1200_s9 + $0x30] sm:$0xff]  ;;  %v839_v9 = vld [vmem:[%s1200_s9 + $0x28] sm:$0xff]  ;;  %p828_p0 = scmp.ne.s32.totalorder %s1079_s15, 1 }
  0x2d   : > { %v849_v2 = vld [vmem:[%s1200_s9 + $0x78] sm:$0xff]  ;;  %514 = vmatpush.bf16.msra.mxu0 %v841_v1  ;;  %v848_v6 = vld [vmem:[%s1200_s9 + $0x70] sm:$0xff]  ;;  %v847_v10 = vld [vmem:[%s1200_s9 + $0x68] sm:$0xff] }
  0x2e   : > { %v857_v3 = vld [vmem:[%s1200_s9 + $0xb8] sm:$0xff]  ;;  %527 = vmatpush.bf16.msra.mxu1 %v849_v2  ;;  %v856_v7 = vld [vmem:[%s1200_s9 + $0xb0] sm:$0xff]  ;;  %v855_v11 = vld [vmem:[%s1200_s9 + $0xa8] sm:$0xff] }
  0x2f   : > { %v865_v4 = vld [vmem:[%s1200_s9 + $0xf8] sm:$0xff]  ;;  %540 = vmatpush.bf16.msra.mxu2 %v857_v3  ;;  %v864_v8 = vld [vmem:[%s1200_s9 + $0xf0] sm:$0xff]  ;;  %v863_v12 = vld [vmem:[%s1200_s9 + $0xe8] sm:$0xff] }
  0x30   : > { %553 = vmatpush.bf16.msra.mxu3 %v865_v4  ;;  %v838_v13 = vld [vmem:[%s1200_s9 + $0x20] sm:$0xff]  ;;  %v247_v15 = vld [vmem:[%s1194_s6] sm:$0xf]  ;;  %v836_v22 = vld [vmem:[%s1200_s9 + $0x10] sm:$0xff] }
  0x31   : > { %515 = vmatpush.bf16.msra.mxu0 %v840_v5  ;;  %v846_v14 = vld [vmem:[%s1200_s9 + $0x60] sm:$0xff]  ;;  %313 = vst [vmem:[#allocation1] ss:$9 sm:$0xff] %v247_v15  ;;  %v837_v18 = vld [vmem:[%s1200_s9 + $0x18] sm:$0xff]  ;;  %v844_v23 = vld [vmem:[%s1200_s9 + $0x50] sm:$0xff] }
  0x32   : > { %528 = vmatpush.bf16.msra.mxu1 %v848_v6  ;;  %v854_v16 = vld [vmem:[%s1200_s9 + $0xa0] sm:$0xff]  ;;  %v845_v19 = vld [vmem:[%s1200_s9 + $0x58] sm:$0xff]  ;;  %v852_v24 = vld [vmem:[%s1200_s9 + $0x90] sm:$0xff] }
  0x33   : > { %541 = vmatpush.bf16.msra.mxu2 %v856_v7  ;;  %v862_v17 = vld [vmem:[%s1200_s9 + $0xe0] sm:$0xff]  ;;  %v853_v20 = vld [vmem:[%s1200_s9 + $0x98] sm:$0xff]  ;;  %v860_v25 = vld [vmem:[%s1200_s9 + $0xd0] sm:$0xff] }
  0x34   : > { %554 = vmatpush.bf16.msra.mxu3 %v864_v8  ;;  %v861_v21 = vld [vmem:[%s1200_s9 + $0xd8] sm:$0xff]  ;;  %v835_v26 = vld [vmem:[%s1200_s9 + $0x8] sm:$0xff]  ;;  %v834_v30 = vld [vmem:[%s1200_s9] sm:$0xff] }
  0x35   : > { %516 = vmatpush.bf16.msra.mxu0 %v839_v9  ;;  %v843_v27 = vld [vmem:[%s1200_s9 + $0x48] sm:$0xff]  ;;  %v842_v31 = vld [vmem:[%s1200_s9 + $0x40] sm:$0xff]  ;;  %v246_v46 = vld [vmem:[#allocation2] sm:$0x3] }
  0x36   : > { %529 = vmatpush.bf16.msra.mxu1 %v847_v10  ;;  %v851_v28 = vld [vmem:[%s1200_s9 + $0x88] sm:$0xff]  ;;  %v850_v32 = vld [vmem:[%s1200_s9 + $0x80] sm:$0xff] }
  0x37   : > { %542 = vmatpush.bf16.msra.mxu2 %v855_v11  ;;  %v859_v29 = vld [vmem:[%s1200_s9 + $0xc8] sm:$0xff]  ;;  %v858_v33 = vld [vmem:[%s1200_s9 + $0xc0] sm:$0xff] }
  0x38   : > { %555 = vmatpush.bf16.msra.mxu3 %v863_v12  ;;  %v314_v34 = vld [vmem:[#allocation1] sm:$0xff]  ;;  %v315_v35 = vld [vmem:[#allocation1 + $0x9] sm:$0xff]  ;;  %v316_v36 = vld [vmem:[#allocation1 + $0x12] sm:$0xff] }
  0x39   : > { %517 = vmatpush.bf16.msra.mxu0 %v838_v13  ;;  %v317_v37 = vld [vmem:[#allocation1 + $0x1b] sm:$0xff] }
  0x3a   : > { %530 = vmatpush.bf16.msra.mxu1 %v846_v14 }
  0x3b   : > { %543 = vmatpush.bf16.msra.mxu2 %v854_v16 }
  0x3c   : > { %556 = vmatpush.bf16.msra.mxu3 %v862_v17 }
  0x3d   : > { %518 = vmatpush.bf16.msra.mxu0 %v837_v18 }
  0x3e   : > { %531 = vmatpush.bf16.msra.mxu1 %v845_v19 }
  0x3f   : > { %544 = vmatpush.bf16.msra.mxu2 %v853_v20 }
  0x40   : > { %557 = vmatpush.bf16.msra.mxu3 %v861_v21 }
  0x41   : > { %519 = vmatpush.bf16.msra.mxu0 %v836_v22 }
  0x42   : > { %532 = vmatpush.bf16.msra.mxu1 %v844_v23 }
  0x43   : > { %545 = vmatpush.bf16.msra.mxu2 %v852_v24 }
  0x44   : > { %558 = vmatpush.bf16.msra.mxu3 %v860_v25 }
  0x45   : > { %520 = vmatpush.bf16.msra.mxu0 %v835_v26 }
  0x46   : > { %533 = vmatpush.bf16.msra.mxu1 %v843_v27 }
  0x47   : > { %546 = vmatpush.bf16.msra.mxu2 %v851_v28 }
  0x48   : > { %559 = vmatpush.bf16.msra.mxu3 %v859_v29 }
  0x49   : > { %521 = vmatpush.bf16.msra.mxu0 %v834_v30 }
  0x4a   : > { %534 = vmatpush.bf16.msra.mxu1 %v842_v31 }
  0x4b   : > { %547 = vmatpush.bf16.msra.mxu2 %v850_v32 }
  0x4c   : > { %560 = vmatpush.bf16.msra.mxu3 %v858_v33  ;;  %522 = vmatmul.bf16.vlgmr.msra.gmra.mxu0 %v314_v34 }
  0x4d   : > { %535 = vmatmul.bf16.vlgmr.msra.gmra.mxu1 %v315_v35 }
  0x4e   : > { %548 = vmatmul.bf16.vlgmr.msra.gmra.mxu2 %v316_v36 }
  0x4f   : > { %561 = vmatmul.bf16.vlgmr.msra.gmra.mxu3 %v317_v37 }
  0xc9   : > { %v523_v38 = vpop.f32.mrf.mxu0 }
  0xca   : > { %v536_v39 = vpop.f32.mrf.mxu1 }
  0xcb   : > { %v537_v40 = vadd.f32 %v536_v39, %v523_v38 }
  0xd1   : > { %v549_v41 = vpop.f32.mrf.mxu2  ;;  %v525_v44 = vpop.f32.mrf.mxu0 }
  0xd2   : > { %v562_v42 = vpop.f32.mrf.mxu3  ;;  %v550_v43 = vadd.f32 %v549_v41, %v537_v40  ;;  %v538_v45 = vpop.f32.mrf.mxu1 }
  0xd4   : > { %v563_v47 = vadd.f32 %v562_v42, %v550_v43 }
  0xd6   : > { %v566_v48 = vadd.f32 %v563_v47, %v246_v46  ;;  %571 = sbr.rel (%p828_p0) target bundleno = 481 (0x1e1), region = 48 }
  0xd8   : > { %567 = vst [vmem:[#allocation2] sm:$0x3] %v566_v48 }
  0xd9   : > { %v551_v49 = vpop.f32.mrf.mxu2 }
  0xda   : > { %v564_v50 = vpop.f32.mrf.mxu3 }
  0xdb   : > { %v936_v52 = vld [vmem:[%s1269_s2] ss:$0 sm:$0xff]  ;;  %vm578_vm0 = vcmask 1041408  }
  0xdf   : > { %v572_v51 = vld [vmem:[#allocation2] sm:$0x3] }
  0xe0   : > { %v577_v53 = vadd.f32 %v936_v52, %v572_v51 }
  0xe2   : > { %v579_v54 = vsel %vm578_vm0, %v577_v53, -inf }
  0xe3   : > { %580 = vmax.xlane.f32.xlu0 %v579_v54 }
 0x156   : > { %v581_v55 = vpop.xlane.xlu0 %580 }
 0x157   : > { %v582_v56 = vsub.f32 %v577_v53, %v581_v55 }
 0x159   : > { %v583_v57 = vmul.f32 1.442695, %v582_v56 }
 0x15b   : > { %937 = vpow2.f32 %v583_v57 }
 0x161   : > { %v938_v58 = vpop.eup %937 }
 0x162   : > { %v585_v59 = vsel %vm578_vm0, %v938_v58, 0.0 }
 0x163   : > { %586 = vadd.xlane.f32.xlu0 %v585_v59 }
 0x1d6   : > { %v587_v60 = vpop.xlane.xlu0 %586 }
 0x1d7   : > { %939 = vrcp.f32 %v587_v60 }
 0x1dd   : > { %v940_v61 = vpop.eup %939 }
 0x1de   : > { %v589_v62 = vmul.f32 %v940_v61, %v938_v58 }
 0x1e0   : > { %590 = vst [vmem:[#allocation8] sm:$0x3] %v589_v62 }
 0x1e1 PF: > { %p882_p1 = scmp.eq.s32.totalorder %s688_s18, 1  ;;  %s601_s11 = sshll.u32 %s1270_s3, 4  ;;  %s602_s11 = int_to_ptr.hbm [resolvable:$true] %s601_s11 }
 0x1e2   : > { %s1092_s12 = smov [#allocation8]  }
 0x1e3   : > { %s599_s20 = sshll.u32 %s1092_s12, 4  ;;  %s600_s20 = int_to_ptr.vmem [resolvable:$true] %s599_s20 }
 0x1e4   : > { %871 = dma.vmem_to_hbm [thread:$0]  (%p882_p1), %s600_s20, 32, %s602_s11, [#allocation5]  }
 0x1e5   : > { %1062 = dma.done.wait (%p882_p1), [#allocation5], 32  }
 0x1e6   : > { %1064 = vsyncadd (%p882_p1), [#allocation5], 4294967264 }
 0x1e7 PF: > { %s20_s17 = sadd.s32 1, %s1087_s17   ;;  %s1274_s12 = smov %s1071_s13 }
 0x1e8   : > { %p17_p2 = scmp.ge.s32.totalorder %s20_s17, 4   ;;  %s1275_s13 = smov %s1075_s14 }
 0x1e9   : > { %s1276_s14 = smov %s1164_s24  ;;  %s1277_s15 = smov %s1083_s16 }
 0x1ea   : > { %s1278_s16 = smov %s1280_s19  ;;  %19 = sbr.rel (!%p17_p2) target bundleno = 7 (0x7), region = 91 }
 0x1ef   :  { %615 = vsyncpa [#allocation4], 1 }
 0x1f0   :  { %617 = vsyncpa [#allocation4 + $0x1], 1 }
 0x1f1   :  { %618 = vsyncpa [#allocation7], 1 }
 0x1f2   :  { %620 = vsyncpa [#allocation7 + $0x1], 1 }
 0x1f3   :  { %621 = vsyncpa [#allocation5], 1 }
 0x1f4   :  { %623 = vsyncpa [#allocation5 + $0x1], 1 }

</bundles_post_ra>
